<compile_context>
chip_gen: v5e
topology: v5e:2x2
jax: 0.10.0
libtpu: 0.0.40
codegen_flags: <defaults>
</compile_context>

<pallas_src>
import functools
import math

import jax
import jax.numpy as jnp
from jax.experimental import pallas as pl
from jax.experimental.pallas import tpu as pltpu


def _round_up(x: int, m: int) -> int:
    return ((x + m - 1) // m) * m


# ---------------------------------------------------------------------------
# Fused kernel: every MLP layer applied to one row tile while it stays in VMEM.
# refs = (x_ref, w_first_ref, [w_mid_ref], [w_last_ref], o_ref)
# ---------------------------------------------------------------------------
def _fused_mlp_kernel(*refs, n_mid, has_last, res_first, res_mid, res_last,
                      matmul_dtype, mid_unroll):
    x_ref = refs[0]
    o_ref = refs[-1]
    w_refs = refs[1:-1]
    idx = 0
    w_first_ref = w_refs[idx]; idx += 1
    w_mid_ref = None
    if n_mid > 0:
        w_mid_ref = w_refs[idx]; idx += 1
    w_last_ref = w_refs[idx] if has_last else None

    def apply_layer(h, w, res):
        # Low-precision MXU inputs, f32 accumulation; tanh runs on the EUP.
        z = jnp.dot(h.astype(matmul_dtype), w.astype(matmul_dtype),
                    preferred_element_type=jnp.float32)
        z = jnp.tanh(z)
        if res:
            z = z + h
        return z

    h = x_ref[...].astype(jnp.float32)
    h = apply_layer(h, w_first_ref[...], res_first)

    if n_mid > 0:
        if mid_unroll:
            for l in range(n_mid):  # small static trip count -> unrolled
                h = apply_layer(h, w_mid_ref[l], res_mid)
        else:
            # Deep stacks: keep the body compact (no vreg live-range bloat).
            def body(l, carry):
                return apply_layer(carry, w_mid_ref[l], res_mid)
            h = jax.lax.fori_loop(0, n_mid, body, h)

    if has_last:
        h = apply_layer(h, w_last_ref[...], res_last)

    o_ref[...] = h.astype(o_ref.dtype)


# ---------------------------------------------------------------------------
# One-time capability probes.
# ---------------------------------------------------------------------------
_BUFFERED_ONE_OK = None


def _buffered_one_supported() -> bool:
    """Probe whether pipeline_mode=pl.Buffered(1) compiles on this install."""
    global _BUFFERED_ONE_OK
    if _BUFFERED_ONE_OK is None:
        try:
            def k(x_ref, o_ref):
                o_ref[...] = x_ref[...] + 1.0

            spec = pl.BlockSpec((8, 128), lambda i: (0, 0),
                                pipeline_mode=pl.Buffered(1))
            fn = pl.pallas_call(
                k,
                out_shape=jax.ShapeDtypeStruct((8, 128), jnp.float32),
                grid=(1,),
                in_specs=[spec],
                out_specs=pl.BlockSpec((8, 128), lambda i: (0, 0)),
            )
            jax.block_until_ready(fn(jnp.zeros((8, 128), jnp.float32)))
            _BUFFERED_ONE_OK = True
        except Exception:
            _BUFFERED_ONE_OK = False
    return _BUFFERED_ONE_OK


def _physical_vmem_bytes() -> int:
    try:
        return int(pltpu.get_tpu_info().vmem_capacity_bytes)
    except Exception:
        return 64 * 1024 * 1024  # conservative: v7x per-TensorCore VMEM


# ---------------------------------------------------------------------------
# Builder: pad weights once, return a jitted forward(g, features).
# ---------------------------------------------------------------------------
def make_res_mlp_forward(weights, *, residual=False, tm=512,
                         matmul_dtype=jnp.bfloat16):
    """Builds forward(g, features) for ResMLPNet.

    weights[i] has shape [F_in_i, F_out_i] (== PyTorch nn.Linear weight.T).
    The graph argument `g` is ignored (the MLP layers never read it).
    """
    num_layers = len(weights)
    assert num_layers >= 1
    num_feats = int(weights[0].shape[0])
    num_out = int(weights[-1].shape[1])
    matmul_dtype = jnp.dtype(matmul_dtype)

    # ---- per-layer lane-dense padding (each dim to a multiple of 128) -------
    def pad_w(w):
        fi, fo = int(w.shape[0]), int(w.shape[1])
        fip, fop = _round_up(fi, 128), _round_up(fo, 128)
        wp = jnp.zeros((fip, fop), jnp.float32).at[:fi, :fo].set(
            jnp.asarray(w, jnp.float32))
        return wp.astype(matmul_dtype)

    w_first_p = pad_w(weights[0])
    has_last = num_layers >= 2
    mids = list(weights[1:-1]) if num_layers >= 3 else []
    n_mid = len(mids)
    if n_mid > 0:
        assert all(w.shape == mids[0].shape for w in mids), \
            "hidden layers must share one shape"
        w_mid_p = jnp.stack([pad_w(w) for w in mids], axis=0)
    else:
        w_mid_p = None
    w_last_p = pad_w(weights[-1]) if has_last else None

    f_pad = int(w_first_p.shape[0])
    c_pad = int((w_last_p if has_last else w_first_p).shape[1])
    all_pads = [f_pad] + [_round_up(int(w.shape[1]), 128) for w in weights]
    max_pad = max(all_pads)

    # Residual only where the true (unpadded) in/out dims match.
    res_first = bool(residual and weights[0].shape[0] == weights[0].shape[1])
    res_mid = bool(residual)  # mid layers are square by construction
    res_last = bool(residual and has_last
                    and weights[-1].shape[0] == weights[-1].shape[1])

    w_args = (w_first_p,)
    if n_mid > 0:
        w_args += (w_mid_p,)
    if has_last:
        w_args += (w_last_p,)

    buffered_ok = _buffered_one_supported()
    vmem_cap = int(0.85 * _physical_vmem_bytes())
    w_itemsize = matmul_dtype.itemsize
    w_bytes_one_buf = sum(math.prod(w.shape) * w_itemsize for w in w_args)

    kernel = functools.partial(
        _fused_mlp_kernel,
        n_mid=n_mid, has_last=has_last,
        res_first=res_first, res_mid=res_mid, res_last=res_last,
        matmul_dtype=matmul_dtype,
        mid_unroll=(n_mid <= 8),
    )

    def _w_spec(shape):
        nblk = len(shape)
        idx_map = lambda i: (0,) * nblk
        if buffered_ok:
            # Fetched once (constant index_map): one resident buffer suffices.
            return pl.BlockSpec(shape, idx_map, pipeline_mode=pl.Buffered(1))
        return pl.BlockSpec(shape, idx_map)

    def _forward_impl(features, *w_padded):
        n, f = features.shape
        assert f == num_feats, (f, num_feats)

        # Row tiling: big MXU-friendly tiles, but keep >=2 grid steps when
        # possible so the "parallel" axis can shard across v7x's 2 TCs.
        n8 = _round_up(n, 8)
        tm_eff = max(8, min(tm, n8))
        if n8 > 8 and n8 <= tm_eff:
            tm_eff = ((n8 // 8 + 1) // 2) * 8
        n_pad = _round_up(n, tm_eff)

        # Zero padding is exact: no bias and tanh(0)=0 keep padded lanes zero.
        x_pad = jnp.zeros((n_pad, f_pad), jnp.float32)
        x_pad = x_pad.at[:n, :f].set(features.astype(jnp.float32))

        # Generation-aware VMEM budget instead of a hardcoded 64 MiB.
        wbuf = 1 if buffered_ok else 2
        needed = (w_bytes_one_buf * wbuf          # resident weights
                  + 2 * tm_eff * f_pad * 4        # input double buffer
                  + 2 * tm_eff * c_pad * 4        # output double buffer
                  + 3 * tm_eff * max_pad * 4)     # live h/z intermediates
        vmem_limit = min(max(int(1.5 * needed) + (4 << 20), 32 << 20),
                         vmem_cap)

        in_specs = [pl.BlockSpec((tm_eff, f_pad), lambda i: (i, 0))]
        in_specs += [_w_spec(tuple(int(s) for s in w.shape))
                     for w in w_padded]

        out_pad = pl.pallas_call(
            kernel,
            out_shape=jax.ShapeDtypeStruct((n_pad, c_pad), jnp.float32),
            grid_spec=pltpu.PrefetchScalarGridSpec(
                num_scalar_prefetch=0,
                grid=(n_pad // tm_eff,),
                in_specs=in_specs,
                out_specs=pl.BlockSpec((tm_eff, c_pad), lambda i: (i, 0)),
            ),
            compiler_params=pltpu.CompilerParams(
                dimension_semantics=("parallel",),
                vmem_limit_bytes=vmem_limit,
            ),
        )(x_pad, *w_padded)

        return out_pad[:n, :num_out]

    fwd = jax.jit(_forward_impl)

    def forward(g, features):
        del g  # the MLP baseline never reads the graph
        return fwd(features, *w_args)

    return forward


def init_res_mlp_params(key, num_feats, num_classes, num_hidden, num_layers):
    """Deterministic weight init; returns a list of [F_in, F_out] matrices
    (layer dims match the PyTorch module's constructor)."""
    dims = []
    for i in range(num_layers):
        if i == 0:
            dims.append((num_feats, num_hidden))
        elif i == num_layers - 1:
            dims.append((num_hidden, num_classes))
        else:
            dims.append((num_hidden, num_hidden))
    weights = []
    for d_in, d_out in dims:
        key, sub = jax.random.split(key)
        scale = 1.0 / jnp.sqrt(jnp.float32(d_in))
        weights.append(
            scale * jax.random.normal(sub, (d_in, d_out), jnp.float32))
    return weights


if __name__ == "__main__":
    N = 512
    num_feats = 32
    num_hidden = 64
    num_classes = 16
    num_layers = 3

    key = jax.random.PRNGKey(0)
    key, kx = jax.random.split(key)
    features = jax.random.normal(kx, (N, num_feats), jnp.float32)
    weights = init_res_mlp_params(key, num_feats, num_classes, num_hidden,
                                  num_layers)
    g = None  # placeholder graph argument (unused, matches PyTorch signature)

    # Pure-JAX reference (f32, highest precision).
    ref = features
    for w in weights:
        ref = jnp.tanh(jnp.dot(ref, w, precision=jax.lax.Precision.HIGHEST))

    # Strict-parity path: f32 MXU inputs.
    fwd_f32 = make_res_mlp_forward(weights, residual=False,
                                   matmul_dtype=jnp.float32)
    out_f32 = jax.block_until_ready(fwd_f32(g, features))
    assert out_f32.shape == (N, num_classes)
    err_f32 = float(jnp.max(jnp.abs(out_f32 - ref)))
    assert err_f32 < 1e-4, err_f32

    # Default fast path: bf16 MXU inputs with f32 accumulation.
    fwd_bf16 = make_res_mlp_forward(weights, residual=False,
                                    matmul_dtype=jnp.bfloat16)
    out_bf16 = jax.block_until_ready(fwd_bf16(g, features))
    assert out_bf16.shape == (N, num_classes)
    err_bf16 = float(jnp.max(jnp.abs(out_bf16 - ref)))
    assert err_bf16 < 5e-2, err_bf16

    print("KERNEL_OK")
</pallas_src>

<mosaic_0001>
module attributes {stable_mosaic.version = 11 : i64} {
  func.func @k(%arg0: i32, %arg1: memref<8x128xf32, #tpu.memory_space<vmem>>, %arg2: memref<8x128xf32, #tpu.memory_space<vmem>>) attributes {dimension_semantics = [#tpu.dimension_semantics<arbitrary>], iteration_bounds = array<i64: 1>, scalar_prefetch = 0 : i64, scratch_operands = 0 : i64, tpu.core_type = #tpu.core_type<tc>, window_params = [{pipeline_mode = #tpu.pipeline_mode<synchronous>, transform_indices = @transform_0, window_bounds = array<i64: 8, 128>}, {pipeline_mode = #tpu.pipeline_mode<synchronous>, transform_indices = @transform_1, window_bounds = array<i64: 8, 128>}]} {
    %c0 = arith.constant 0 : index
    %c0_0 = arith.constant 0 : index
    %0 = vector.load %arg1[%c0, %c0_0] : memref<8x128xf32, #tpu.memory_space<vmem>>, vector<8x128xf32>
    %cst = arith.constant 1.000000e+00 : f32
    %1 = vector.broadcast %cst : f32 to vector<8x128xf32>
    %2 = arith.addf %0, %1 : vector<8x128xf32>
    %c0_1 = arith.constant 0 : index
    %c0_2 = arith.constant 0 : index
    %3 = vector.load %arg2[%c0_1, %c0_2] : memref<8x128xf32, #tpu.memory_space<vmem>>, vector<8x128xf32>
    tpu.vector_store %arg2[%c0_1, %c0_2], %2 {strides = array<i32>} : memref<8x128xf32, #tpu.memory_space<vmem>>, vector<8x128xf32>,
    return
  }
  func.func @transform_0(%arg0: i32) -> (i32, i32) {
    %c0_i32 = arith.constant 0 : i32
    %c0_i32_0 = arith.constant 0 : i32
    %c0_i32_1 = arith.constant 0 : i32
    return %c0_i32, %c0_i32_0 : i32, i32
  }
  func.func @transform_1(%arg0: i32) -> (i32, i32) {
    %c0_i32 = arith.constant 0 : i32
    %c0_i32_0 = arith.constant 0 : i32
    %c0_i32_1 = arith.constant 0 : i32
    return %c0_i32, %c0_i32_0 : i32, i32
  }
}

module attributes {stable_mosaic.version = 11 : i64} {
  func.func @_fused_mlp_kernel(%arg0: i32, %arg1: memref<256x128xf32, #tpu.memory_space<vmem>>, %arg2: memref<128x128xf32, #tpu.memory_space<vmem>>, %arg3: memref<1x128x128xf32, #tpu.memory_space<vmem>>, %arg4: memref<128x128xf32, #tpu.memory_space<vmem>>, %arg5: memref<256x128xf32, #tpu.memory_space<vmem>>) attributes {dimension_semantics = [#tpu.dimension_semantics<parallel>], iteration_bounds = array<i64: 2>, scalar_prefetch = 0 : i64, scratch_operands = 0 : i64, tpu.core_type = #tpu.core_type<tc>, window_params = [{transform_indices = @transform_0, window_bounds = array<i64: 256, 128>}, {pipeline_mode = #tpu.pipeline_mode<synchronous>, transform_indices = @transform_1, window_bounds = array<i64: 128, 128>}, {pipeline_mode = #tpu.pipeline_mode<synchronous>, transform_indices = @transform_2, window_bounds = array<i64: 1, 128, 128>}, {pipeline_mode = #tpu.pipeline_mode<synchronous>, transform_indices = @transform_3, window_bounds = array<i64: 128, 128>}, {transform_indices = @transform_4, window_bounds = array<i64: 256, 128>}]} {
    %c0 = arith.constant 0 : index
    %c0_0 = arith.constant 0 : index
    %0 = vector.load %arg1[%c0, %c0_0] : memref<256x128xf32, #tpu.memory_space<vmem>>, vector<256x128xf32>
    %c0_1 = arith.constant 0 : index
    %c0_2 = arith.constant 0 : index
    %1 = vector.load %arg2[%c0_1, %c0_2] : memref<128x128xf32, #tpu.memory_space<vmem>>, vector<128x128xf32>
    %cst = arith.constant dense<0.000000e+00> : vector<256x128xf32>
    %2 = tpu.matmul %0, %1, %cst {dimension_numbers = #tpu.dot_dimension_numbers<[1], [0], [0], [1], [0, 0, 1, 1], [], []>} : vector<256x128xf32>, vector<128x128xf32>, vector<256x128xf32> -> vector<256x128xf32>
    %3 = math.tanh %2 : vector<256x128xf32>
    %c0_3 = arith.constant 0 : index
    %c0_4 = arith.constant 0 : index
    %c0_5 = arith.constant 0 : index
    %4 = vector.load %arg3[%c0_3, %c0_4, %c0_5] : memref<1x128x128xf32, #tpu.memory_space<vmem>>, vector<1x128x128xf32>
    %5 = vector.shape_cast %4 : vector<1x128x128xf32> to vector<128x128xf32>
    %cst_6 = arith.constant dense<0.000000e+00> : vector<256x128xf32>
    %6 = tpu.matmul %3, %5, %cst_6 {dimension_numbers = #tpu.dot_dimension_numbers<[1], [0], [0], [1], [0, 0, 1, 1], [], []>} : vector<256x128xf32>, vector<128x128xf32>, vector<256x128xf32> -> vector<256x128xf32>
    %7 = math.tanh %6 : vector<256x128xf32>
    %c0_7 = arith.constant 0 : index
    %c0_8 = arith.constant 0 : index
    %8 = vector.load %arg4[%c0_7, %c0_8] : memref<128x128xf32, #tpu.memory_space<vmem>>, vector<128x128xf32>
    %cst_9 = arith.constant dense<0.000000e+00> : vector<256x128xf32>
    %9 = tpu.matmul %7, %8, %cst_9 {dimension_numbers = #tpu.dot_dimension_numbers<[1], [0], [0], [1], [0, 0, 1, 1], [], []>} : vector<256x128xf32>, vector<128x128xf32>, vector<256x128xf32> -> vector<256x128xf32>
    %10 = math.tanh %9 : vector<256x128xf32>
    %c0_10 = arith.constant 0 : index
    %c0_11 = arith.constant 0 : index
    %11 = vector.load %arg5[%c0_10, %c0_11] : memref<256x128xf32, #tpu.memory_space<vmem>>, vector<256x128xf32>
    tpu.vector_store %arg5[%c0_10, %c0_11], %10 {strides = array<i32>} : memref<256x128xf32, #tpu.memory_space<vmem>>, vector<256x128xf32>,
    return
  }
  func.func @transform_0(%arg0: i32) -> (i32, i32) {
    %c0_i32 = arith.constant 0 : i32
    %c0_i32_0 = arith.constant 0 : i32
    return %arg0, %c0_i32 : i32, i32
  }
  func.func @transform_1(%arg0: i32) -> (i32, i32) {
    %c0_i32 = arith.constant 0 : i32
    %c0_i32_0 = arith.constant 0 : i32
    %c0_i32_1 = arith.constant 0 : i32
    return %c0_i32, %c0_i32_0 : i32, i32
  }
  func.func @transform_2(%arg0: i32) -> (i32, i32, i32) {
    %c0_i32 = arith.constant 0 : i32
    %c0_i32_0 = arith.constant 0 : i32
    %c0_i32_1 = arith.constant 0 : i32
    %c0_i32_2 = arith.constant 0 : i32
    return %c0_i32, %c0_i32_0, %c0_i32_1 : i32, i32, i32
  }
  func.func @transform_3(%arg0: i32) -> (i32, i32) {
    %c0_i32 = arith.constant 0 : i32
    %c0_i32_0 = arith.constant 0 : i32
    %c0_i32_1 = arith.constant 0 : i32
    return %c0_i32, %c0_i32_0 : i32, i32
  }
  func.func @transform_4(%arg0: i32) -> (i32, i32) {
    %c0_i32 = arith.constant 0 : i32
    %c0_i32_0 = arith.constant 0 : i32
    return %arg0, %c0_i32 : i32, i32
  }
}

</mosaic_0001>

<bundles_post_ra>
// kernel: tpu_custom_call.1
= control target key start
LH: loop header
LB: loop body
LE: loop exit
PB: predicated region body
PF: predicated region fallthrough
CT: control target
= control target key end

     0   :  { %6 = vsyncpa [#allocation3], 0  ;;  %s115_s0 = inlined_call_operand.hbm [shape: f32[8,128], index: 0, kind: input, shape index: {}]   ;;  %s116_s1 = inlined_call_operand.hbm [shape: f32[8,128], index: 1, kind: output, shape index: {}]  }
   0x1   :  { %7 = vsyncpa [#allocation4], 0  ;;  %s13_s8 = sshll.u32 %s115_s0, 4  ;;  %s97_s9 = smov [#allocation2]   ;;  %s14_s8 = int_to_ptr.hbm [resolvable:$true] %s13_s8 }
   0x2   :  { %s15_s10 = sshll.u32 %s97_s9, 4  ;;  %s16_s10 = int_to_ptr.vmem [resolvable:$true] %s15_s10 }
   0x3   :  { %18 = dma.hbm_to_vmem [thread:$0]  %s14_s8, 128, %s16_s10, [#allocation3]  }
   0x4   :  { %93 = dma.done.wait [#allocation3], 128  }
   0x5   :  { %94 = vsyncadd [#allocation3], 4294967168  ;;  %s98_s11 = smov [#allocation5]   ;;  %s33_s15 = sshll.u32 %s116_s1, 4  ;;  %v23_v0 = vld [vmem:[#allocation2] sm:$0xff]  ;;  %s34_s15 = int_to_ptr.hbm [resolvable:$true] %s33_s15 }
   0x6   :  { %s31_s12 = sshll.u32 %s98_s11, 4  ;;  %v24_v1 = vadd.f32 1.0, %v23_v0  ;;  %s32_s12 = int_to_ptr.vmem [resolvable:$true] %s31_s12 }
   0x8   :  { %25 = vst [vmem:[#allocation5] sm:$0xff] %v24_v1 }
   0x9   :  { %36 = dma.vmem_to_hbm [thread:$0]  %s32_s12, 128, %s34_s15, [#allocation4]  }
   0xa   :  { %95 = dma.done.wait [#allocation4], 128  }
   0xb   :  { %96 = vsyncadd [#allocation4], 4294967168 }
   0xc   :  { %41 = vsyncpa [#allocation3], 1 }
   0xd   :  { %42 = vsyncpa [#allocation4], 1 }

// kernel: _forward_impl.1
= control target key start
LH: loop header
LB: loop body
LE: loop exit
PB: predicated region body
PF: predicated region fallthrough
CT: control target
= control target key end

     0   :  { %s1096_s15 = smov 0   ;;  %s1332_s0 = inlined_call_operand.vmem [shape: f32[512,128], index: 0, kind: input, shape index: {}]   ;;  %s1333_s1 = inlined_call_operand.vmem [shape: f32[128,128], index: 1, kind: input, shape index: {}]   ;;  %s1334_s2 = inlined_call_operand.vmem [shape: f32[1,128,128], index: 2, kind: input, shape index: {}]   ;;  %s1335_s3 = inlined_call_operand.vmem [shape: f32[128,128], index: 3, kind: input, shape index: {}]   ;;  %s1336_s4 = inlined_call_operand.vmem [shape: f32[512,128], index: 4, kind: output, shape index: {}]  }
   0x1 LB: > { %s804_s16 = sadd.s32 4294967295, %s1069_s15   ;;  %p808_p0 = scmp.ge.s32.totalorder %s1069_s15, 1  ;;  %s1069_s15 = sphi %s1096_s15, %s14_s15  }
   0x2   : > { %p163_p1 = scmp.lt.s32.totalorder %s1069_s15, 3 }
   0x4   : > { %p164_p2 = pnand %p808_p0, %p163_p1 }
   0x5   : > { %s809_s7 = sshll.u32 (!%p164_p2), %s804_s16, 5 }
   0x6   : > { %167 = sbr.rel (%p164_p2) target bundleno = 633 (0x279), region = 36  ;;  %p190_p3 = scmp.lt.s32.totalorder (!%p164_p2), %s809_s7, 63 }
   0xb   : > { %v248_v0 = vld [vmem:[%s1333_s1 + $0x78] sm:$0xff]  ;;  %v247_v1 = vld [vmem:[%s1333_s1 + $0x70] sm:$0xff]  ;;  %v246_v2 = vld [vmem:[%s1333_s1 + $0x68] sm:$0xff]  ;;  %s1338_s7 = smov (!%p190_p3, %s809_s7), 63 }
   0xc   : > { %249 = vmatpush.msra.mxu0 %v248_v0  ;;  %815 = vmatpush.msra.mxu3 %v248_v0  ;;  %v245_v3 = vld [vmem:[%s1333_s1 + $0x60] sm:$0xff]  ;;  %v244_v4 = vld [vmem:[%s1333_s1 + $0x58] sm:$0xff]  ;;  %v243_v5 = vld [vmem:[%s1333_s1 + $0x50] sm:$0xff]  ;;  %s810_s19 = sshll.u32 %s1338_s7, 3 }
   0xd   : > { %v242_v6 = vld [vmem:[%s1333_s1 + $0x48] sm:$0xff]  ;;  %v241_v7 = vld [vmem:[%s1333_s1 + $0x40] sm:$0xff]  ;;  %v240_v8 = vld [vmem:[%s1333_s1 + $0x38] sm:$0xff]  ;;  %s1157_s26 = scalar_lea.vmem %s1332_s0, %s810_s19  ;;  %s1295_s27 = scalar_lea.vmem %s1336_s4, %s810_s19 }
   0xe   : > { %250 = vmatpush.msra.mxu0 %v247_v1  ;;  %816 = vmatpush.msra.mxu3 %v247_v1  ;;  %v239_v9 = vld [vmem:[%s1333_s1 + $0x30] sm:$0xff]  ;;  %v238_v10 = vld [vmem:[%s1333_s1 + $0x28] sm:$0xff]  ;;  %v237_v11 = vld [vmem:[%s1333_s1 + $0x20] sm:$0xff] }
   0xf   : > { %v236_v12 = vld [vmem:[%s1333_s1 + $0x18] sm:$0xff]  ;;  %v235_v13 = vld [vmem:[%s1333_s1 + $0x10] sm:$0xff]  ;;  %v234_v14 = vld [vmem:[%s1333_s1 + $0x8] sm:$0xff] }
  0x10   : > { %251 = vmatpush.msra.mxu0 %v246_v2  ;;  %817 = vmatpush.msra.mxu3 %v246_v2  ;;  %v233_v15 = vld [vmem:[%s1333_s1] sm:$0xff]  ;;  %v202_v17 = vld [vmem:[%s1157_s26 + $0x8] sm:$0xff]  ;;  %v203_v18 = vld [vmem:[%s1157_s26 + $0x10] sm:$0xff] }
  0x11   : > { %v201_v16 = vld [vmem:[%s1157_s26] sm:$0xff]  ;;  %v204_v19 = vld [vmem:[%s1157_s26 + $0x18] sm:$0xff]  ;;  %v206_v21 = vld [vmem:[%s1157_s26 + $0x28] sm:$0xff] }
  0x12   : > { %252 = vmatpush.msra.mxu0 %v245_v3  ;;  %818 = vmatpush.msra.mxu3 %v245_v3  ;;  %v205_v20 = vld [vmem:[%s1157_s26 + $0x20] sm:$0xff]  ;;  %v207_v22 = vld [vmem:[%s1157_s26 + $0x30] sm:$0xff]  ;;  %v208_v23 = vld [vmem:[%s1157_s26 + $0x38] sm:$0xff] }
  0x13   : > { %v209_v24 = vld [vmem:[%s1157_s26 + $0x40] sm:$0xff]  ;;  %v409_v25 = vld [vmem:[%s1334_s2 + $0x78] sm:$0xff]  ;;  %v210_v26 = vld [vmem:[%s1157_s26 + $0x48] sm:$0xff] }
  0x14   : > { %253 = vmatpush.msra.mxu0 %v244_v4  ;;  %819 = vmatpush.msra.mxu3 %v244_v4  ;;  %v408_v27 = vld [vmem:[%s1334_s2 + $0x70] sm:$0xff]  ;;  %v407_v28 = vld [vmem:[%s1334_s2 + $0x68] sm:$0xff]  ;;  %v406_v29 = vld [vmem:[%s1334_s2 + $0x60] sm:$0xff] }
  0x15   : > { %410 = vmatpush.msra.mxu1 %v409_v25  ;;  %v405_v30 = vld [vmem:[%s1334_s2 + $0x58] sm:$0xff]  ;;  %v211_v31 = vld [vmem:[%s1157_s26 + $0x50] sm:$0xff]  ;;  %v403_v33 = vld [vmem:[%s1334_s2 + $0x48] sm:$0xff] }
  0x16   : > { %254 = vmatpush.msra.mxu0 %v243_v5  ;;  %820 = vmatpush.msra.mxu3 %v243_v5  ;;  %v404_v32 = vld [vmem:[%s1334_s2 + $0x50] sm:$0xff]  ;;  %v225_v34 = vld [vmem:[%s1157_s26 + $0xc0] sm:$0xff]  ;;  %v401_v36 = vld [vmem:[%s1334_s2 + $0x38] sm:$0xff] }
  0x17   : > { %411 = vmatpush.msra.mxu1 %v408_v27  ;;  %v402_v35 = vld [vmem:[%s1334_s2 + $0x40] sm:$0xff]  ;;  %v212_v37 = vld [vmem:[%s1157_s26 + $0x58] sm:$0xff]  ;;  %v400_v38 = vld [vmem:[%s1334_s2 + $0x30] sm:$0xff] }
  0x18   : > { %255 = vmatpush.msra.mxu0 %v242_v6  ;;  %821 = vmatpush.msra.mxu3 %v242_v6  ;;  %v399_v39 = vld [vmem:[%s1334_s2 + $0x28] sm:$0xff]  ;;  %v398_v41 = vld [vmem:[%s1334_s2 + $0x20] sm:$0xff]  ;;  %v397_v43 = vld [vmem:[%s1334_s2 + $0x18] sm:$0xff] }
  0x19   : > { %412 = vmatpush.msra.mxu1 %v407_v28  ;;  %v226_v40 = vld [vmem:[%s1157_s26 + $0xc8] sm:$0xff]  ;;  %v213_v42 = vld [vmem:[%s1157_s26 + $0x60] sm:$0xff]  ;;  %v396_v44 = vld [vmem:[%s1334_s2 + $0x10] sm:$0xff] }
  0x1a   : > { %256 = vmatpush.msra.mxu0 %v241_v7  ;;  %822 = vmatpush.msra.mxu3 %v241_v7  ;;  %v395_v45 = vld [vmem:[%s1334_s2 + $0x8] sm:$0xff]  ;;  %v227_v46 = vld [vmem:[%s1157_s26 + $0xd0] sm:$0xff]  ;;  %v394_v47 = vld [vmem:[%s1334_s2] sm:$0xff] }
  0x1b   : > { %413 = vmatpush.msra.mxu1 %v406_v29  ;;  %v214_v48 = vld [vmem:[%s1157_s26 + $0x68] sm:$0xff]  ;;  %v228_v49 = vld [vmem:[%s1157_s26 + $0xd8] sm:$0xff]  ;;  %v215_v50 = vld [vmem:[%s1157_s26 + $0x70] sm:$0xff] }
  0x1c   : > { %257 = vmatpush.msra.mxu0 %v240_v8  ;;  %823 = vmatpush.msra.mxu3 %v240_v8  ;;  %v229_v51 = vld [vmem:[%s1157_s26 + $0xe0] sm:$0xff]  ;;  %v216_v52 = vld [vmem:[%s1157_s26 + $0x78] sm:$0xff]  ;;  %v230_v53 = vld [vmem:[%s1157_s26 + $0xe8] sm:$0xff] }
  0x1d   : > { %414 = vmatpush.msra.mxu1 %v405_v30  ;;  %v217_v55 = vld [vmem:[%s1157_s26 + $0x80] sm:$0xff]  ;;  %v231_v56 = vld [vmem:[%s1157_s26 + $0xf0] sm:$0xff]  ;;  %v218_v59 = vld [vmem:[%s1157_s26 + $0x88] sm:$0xff] }
  0x1e   : > { %258 = vmatpush.msra.mxu0 %v239_v9  ;;  %824 = vmatpush.msra.mxu3 %v239_v9  ;;  %v232_v60 = vld [vmem:[%s1157_s26 + $0xf8] sm:$0xff]  ;;  %v219_v63 = vld [vmem:[%s1157_s26 + $0x90] sm:$0xff]  ;;  %v221_v5 = vld [vmem:[%s1157_s26 + $0xa0] sm:$0xff] }
  0x1f   : > { %415 = vmatpush.msra.mxu1 %v404_v32  ;;  %v220_v2 = vld [vmem:[%s1157_s26 + $0x98] sm:$0xff]  ;;  %v222_v8 = vld [vmem:[%s1157_s26 + $0xa8] sm:$0xff] }
  0x20   : > { %259 = vmatpush.msra.mxu0 %v238_v10  ;;  %825 = vmatpush.msra.mxu3 %v238_v10 }
  0x21   : > { %416 = vmatpush.msra.mxu1 %v403_v33 }
  0x22   : > { %260 = vmatpush.msra.mxu0 %v237_v11  ;;  %826 = vmatpush.msra.mxu3 %v237_v11  ;;  %v223_v11 = vld [vmem:[%s1157_s26 + $0xb0] sm:$0xff] }
  0x23   : > { %417 = vmatpush.msra.mxu1 %v402_v35 }
  0x24   : > { %261 = vmatpush.msra.mxu0 %v236_v12  ;;  %827 = vmatpush.msra.mxu3 %v236_v12 }
  0x25   : > { %418 = vmatpush.msra.mxu1 %v401_v36 }
  0x26   : > { %262 = vmatpush.msra.mxu0 %v235_v13  ;;  %828 = vmatpush.msra.mxu3 %v235_v13 }
  0x27   : > { %419 = vmatpush.msra.mxu1 %v400_v38 }
  0x28   : > { %263 = vmatpush.msra.mxu0 %v234_v14  ;;  %829 = vmatpush.msra.mxu3 %v234_v14  ;;  %v224_v14 = vld [vmem:[%s1157_s26 + $0xb8] sm:$0xff] }
  0x29   : > { %420 = vmatpush.msra.mxu1 %v399_v39 }
  0x2a   : > { %264 = vmatpush.msra.mxu0 %v233_v15  ;;  %830 = vmatpush.msra.mxu3 %v233_v15 }
  0x2b   : > { %265 = vmatmul.f32.vlgmr.msra.gmra.mxu0 %v201_v16  ;;  %337 = vmatmul.f32.vlgmr.msra.gmra.mxu3 %v225_v34  ;;  %v561_v34 = vld [vmem:[%s1335_s3 + $0x30] sm:$0xff] }
  0x2c   : > { %831 = vmatpush.msrb.mxu3 %v409_v25  ;;  %421 = vmatpush.msra.mxu1 %v398_v41  ;;  %v566_v25 = vld [vmem:[%s1335_s3 + $0x58] sm:$0xff] }
  0x2e   : > { %832 = vmatpush.msrb.mxu3 %v408_v27  ;;  %422 = vmatpush.msra.mxu1 %v397_v43  ;;  %v565_v27 = vld [vmem:[%s1335_s3 + $0x50] sm:$0xff] }
  0x30   : > { %833 = vmatpush.msrb.mxu3 %v407_v28  ;;  %423 = vmatpush.msra.mxu1 %v396_v44 }
  0x32   : > { %834 = vmatpush.msrb.mxu3 %v406_v29  ;;  %424 = vmatpush.msra.mxu1 %v395_v45 }
  0x33   : > { %268 = vmatmul.f32.gmra.mxu0 %v202_v17  ;;  %340 = vmatmul.f32.gmra.mxu3 %v226_v40  ;;  %v558_v40 = vld [vmem:[%s1335_s3 + $0x18] sm:$0xff] }
  0x34   : > { %835 = vmatpush.msrb.mxu3 %v405_v30  ;;  %425 = vmatpush.msra.mxu1 %v394_v47  ;;  %v564_v30 = vld [vmem:[%s1335_s3 + $0x48] sm:$0xff] }
  0x36   : > { %836 = vmatpush.msrb.mxu3 %v404_v32  ;;  %v562_v32 = vld [vmem:[%s1335_s3 + $0x38] sm:$0xff] }
  0x38   : > { %837 = vmatpush.msrb.mxu3 %v403_v33 }
  0x3a   : > { %838 = vmatpush.msrb.mxu3 %v402_v35 }
  0x3b   : > { %271 = vmatmul.f32.gmra.mxu0 %v203_v18  ;;  %343 = vmatmul.f32.gmra.mxu3 %v227_v46  ;;  %v556_v46 = vld [vmem:[%s1335_s3 + $0x8] sm:$0xff] }
  0x3c   : > { %839 = vmatpush.msrb.mxu3 %v401_v36 }
  0x3e   : > { %840 = vmatpush.msrb.mxu3 %v400_v38  ;;  %v560_v38 = vld [vmem:[%s1335_s3 + $0x28] sm:$0xff] }
  0x40   : > { %841 = vmatpush.msrb.mxu3 %v399_v39  ;;  %v559_v39 = vld [vmem:[%s1335_s3 + $0x20] sm:$0xff] }
  0x42   : > { %842 = vmatpush.msrb.mxu3 %v398_v41 }
  0x43   : > { %274 = vmatmul.f32.gmra.mxu0 %v204_v19  ;;  %346 = vmatmul.f32.gmra.mxu3 %v228_v49  ;;  %v570_v19 = vld [vmem:[%s1335_s3 + $0x78] sm:$0xff] }
  0x44   : > { %843 = vmatpush.msrb.mxu3 %v397_v43  ;;  %571 = vmatpush.msra.mxu2 %v570_v19 }
  0x46   : > { %844 = vmatpush.msrb.mxu3 %v396_v44 }
  0x48   : > { %845 = vmatpush.msrb.mxu3 %v395_v45 }
  0x4a   : > { %846 = vmatpush.msrb.mxu3 %v394_v47  ;;  %v555_v47 = vld [vmem:[%s1335_s3] sm:$0xff] }
  0x4b   : > { %277 = vmatmul.f32.gmra.mxu0 %v205_v20  ;;  %349 = vmatmul.f32.gmra.mxu3 %v229_v51 }
  0x4c   : > { %847 = vmatpush.msra.mxu3 %v570_v19 }
  0x53   : > { %280 = vmatmul.f32.gmra.mxu0 %v206_v21  ;;  %352 = vmatmul.f32.gmra.mxu3 %v230_v53  ;;  %v569_v21 = vld [vmem:[%s1335_s3 + $0x70] sm:$0xff] }
  0x54   : > { %572 = vmatpush.msra.mxu2 %v569_v21  ;;  %848 = vmatpush.msra.mxu3 %v569_v21 }
  0x5b   : > { %283 = vmatmul.f32.gmra.mxu0 %v207_v22  ;;  %355 = vmatmul.f32.gmra.mxu3 %v231_v56 }
  0x63   : > { %286 = vmatmul.f32.gmra.mxu0 %v208_v23  ;;  %358 = vmatmul.f32.gmra.mxu3 %v232_v60  ;;  %v568_v23 = vld [vmem:[%s1335_s3 + $0x68] sm:$0xff] }
  0x64   : > { %573 = vmatpush.msra.mxu2 %v568_v23  ;;  %849 = vmatpush.msra.mxu3 %v568_v23 }
  0x6b   : > { %289 = vmatmul.f32.gmra.mxu0 %v209_v24  ;;  %v567_v24 = vld [vmem:[%s1335_s3 + $0x60] sm:$0xff] }
  0x6c   : > { %574 = vmatpush.msra.mxu2 %v567_v24  ;;  %850 = vmatpush.msra.mxu3 %v567_v24 }
  0x6e   : > { %575 = vmatpush.msra.mxu2 %v566_v25  ;;  %851 = vmatpush.msra.mxu3 %v566_v25 }
  0x70   : > { %576 = vmatpush.msra.mxu2 %v565_v27  ;;  %852 = vmatpush.msra.mxu3 %v565_v27 }
  0x72   : > { %577 = vmatpush.msra.mxu2 %v564_v30  ;;  %853 = vmatpush.msra.mxu3 %v564_v30 }
  0x73   : > { %292 = vmatmul.f32.gmra.mxu0 %v210_v26 }
  0x7b   : > { %295 = vmatmul.f32.gmra.mxu0 %v211_v31  ;;  %v563_v31 = vld [vmem:[%s1335_s3 + $0x40] sm:$0xff] }
  0x7c   : > { %578 = vmatpush.msra.mxu2 %v563_v31  ;;  %854 = vmatpush.msra.mxu3 %v563_v31 }
  0x7e   : > { %579 = vmatpush.msra.mxu2 %v562_v32  ;;  %855 = vmatpush.msra.mxu3 %v562_v32 }
  0x80   : > { %580 = vmatpush.msra.mxu2 %v561_v34  ;;  %856 = vmatpush.msra.mxu3 %v561_v34 }
  0x82   : > { %581 = vmatpush.msra.mxu2 %v560_v38  ;;  %857 = vmatpush.msra.mxu3 %v560_v38 }
  0x83   : > { %298 = vmatmul.f32.gmra.mxu0 %v212_v37 }
  0x84   : > { %582 = vmatpush.msra.mxu2 %v559_v39  ;;  %858 = vmatpush.msra.mxu3 %v559_v39 }
  0x86   : > { %583 = vmatpush.msra.mxu2 %v558_v40  ;;  %859 = vmatpush.msra.mxu3 %v558_v40 }
  0x8b   : > { %301 = vmatmul.f32.gmra.mxu0 %v213_v42  ;;  %v557_v42 = vld [vmem:[%s1335_s3 + $0x10] sm:$0xff] }
  0x8c   : > { %584 = vmatpush.msra.mxu2 %v557_v42  ;;  %860 = vmatpush.msra.mxu3 %v557_v42 }
  0x8e   : > { %585 = vmatpush.msra.mxu2 %v556_v46  ;;  %861 = vmatpush.msra.mxu3 %v556_v46 }
  0x90   : > { %586 = vmatpush.msra.mxu2 %v555_v47  ;;  %862 = vmatpush.msra.mxu3 %v555_v47 }
  0x93   : > { %304 = vmatmul.f32.gmra.mxu0 %v214_v48 }
  0x9b   : > { %307 = vmatmul.f32.gmra.mxu0 %v215_v50 }
  0xa3   : > { %310 = vmatmul.f32.gmra.mxu0 %v216_v52 }
  0xa8   : > { %v266_v54 = vpop.f32.mrf.mxu0 }
  0xa9   : > { %871 = vtanh.f32 %v266_v54 }
  0xab   : > { %313 = vmatmul.f32.gmra.mxu0 %v217_v55 }
  0xae   : > { %v338_v29 = vpop.f32.mrf.mxu3 }
  0xaf   : > { %v872_v57 = vpop.eup %871 }
  0xb0   : > { %v269_v58 = vpop.f32.mrf.mxu0  ;;  %426 = vmatmul.f32.vlgmr.msra.gmra.mxu1 %v872_v57 }
  0xb1   : > { %873 = vtanh.f32 %v269_v58 }
  0xb3   : > { %316 = vmatmul.f32.gmra.mxu0 %v218_v59 }
  0xb6   : > { %v341_v37 = vpop.f32.mrf.mxu3 }
  0xb7   : > { %v874_v61 = vpop.eup %873 }
  0xb8   : > { %v272_v62 = vpop.f32.mrf.mxu0  ;;  %429 = vmatmul.f32.gmra.mxu1 %v874_v61 }
  0xb9   : > { %875 = vtanh.f32 %v272_v62 }
  0xbb   : > { %319 = vmatmul.f32.gmra.mxu0 %v219_v63 }
  0xbe   : > { %v344_v45 = vpop.f32.mrf.mxu3 }
  0xbf   : > { %v876_v0 = vpop.eup %875 }
  0xc0   : > { %v275_v1 = vpop.f32.mrf.mxu0  ;;  %432 = vmatmul.f32.gmra.mxu1 %v876_v0 }
  0xc1   : > { %877 = vtanh.f32 %v275_v1 }
  0xc3   : > { %322 = vmatmul.f32.gmra.mxu0 %v220_v2 }
  0xc6   : > { %v347_v51 = vpop.f32.mrf.mxu3 }
  0xc7   : > { %v878_v3 = vpop.eup %877 }
  0xc8   : > { %v278_v4 = vpop.f32.mrf.mxu0  ;;  %435 = vmatmul.f32.gmra.mxu1 %v878_v3 }
  0xc9   : > { %879 = vtanh.f32 %v278_v4 }
  0xcb   : > { %325 = vmatmul.f32.gmra.mxu0 %v221_v5 }
  0xce   : > { %v350_v55 = vpop.f32.mrf.mxu3 }
  0xcf   : > { %v880_v6 = vpop.eup %879 }
  0xd0   : > { %v281_v7 = vpop.f32.mrf.mxu0  ;;  %438 = vmatmul.f32.gmra.mxu1 %v880_v6 }
  0xd1   : > { %881 = vtanh.f32 %v281_v7 }
  0xd3   : > { %328 = vmatmul.f32.gmra.mxu0 %v222_v8 }
  0xd6   : > { %v353_v59 = vpop.f32.mrf.mxu3 }
  0xd7   : > { %v882_v9 = vpop.eup %881 }
  0xd8   : > { %v284_v10 = vpop.f32.mrf.mxu0  ;;  %441 = vmatmul.f32.gmra.mxu1 %v882_v9 }
  0xd9   : > { %883 = vtanh.f32 %v284_v10 }
  0xdb   : > { %331 = vmatmul.f32.gmra.mxu0 %v223_v11 }
  0xde   : > { %v356_v0 = vpop.f32.mrf.mxu3 }
  0xdf   : > { %v884_v12 = vpop.eup %883 }
  0xe0   : > { %v287_v13 = vpop.f32.mrf.mxu0  ;;  %444 = vmatmul.f32.gmra.mxu1 %v884_v12 }
  0xe1   : > { %885 = vtanh.f32 %v287_v13 }
  0xe3   : > { %334 = vmatmul.f32.gmra.mxu0 %v224_v14 }
  0xe6   : > { %v359_v6 = vpop.f32.mrf.mxu3 }
  0xe7   : > { %v886_v15 = vpop.eup %885 }
  0xe8   : > { %v290_v16 = vpop.f32.mrf.mxu0  ;;  %447 = vmatmul.f32.gmra.mxu1 %v886_v15 }
  0xe9   : > { %887 = vtanh.f32 %v290_v16 }
  0xef   : > { %v888_v17 = vpop.eup %887 }
  0xf0   : > { %v293_v18 = vpop.f32.mrf.mxu0  ;;  %450 = vmatmul.f32.gmra.mxu1 %v888_v17 }
  0xf1   : > { %889 = vtanh.f32 %v293_v18 }
  0xf7   : > { %v890_v20 = vpop.eup %889 }
  0xf8   : > { %v296_v22 = vpop.f32.mrf.mxu0  ;;  %453 = vmatmul.f32.gmra.mxu1 %v890_v20 }
  0xf9   : > { %891 = vtanh.f32 %v296_v22 }
  0xff   : > { %v892_v26 = vpop.eup %891 }
 0x100   : > { %v299_v28 = vpop.f32.mrf.mxu0  ;;  %456 = vmatmul.f32.gmra.mxu1 %v892_v26 }
 0x101   : > { %893 = vtanh.f32 %v299_v28 }
 0x102   : > { %895 = vtanh.f32 %v338_v29 }
 0x107   : > { %v894_v33 = vpop.eup %893 }
 0x108   : > { %v896_v35 = vpop.eup %895  ;;  %v302_v36 = vpop.f32.mrf.mxu0  ;;  %459 = vmatmul.f32.gmra.mxu1 %v894_v33 }
 0x109   : > { %897 = vtanh.f32 %v302_v36  ;;  %498 = vmatmul.f32.vlgmr.msrb.gmra.mxu3 %v896_v35 }
 0x10a   : > { %899 = vtanh.f32 %v341_v37 }
 0x10f   : > { %v898_v41 = vpop.eup %897 }
 0x110   : > { %v900_v43 = vpop.eup %899  ;;  %v305_v44 = vpop.f32.mrf.mxu0  ;;  %462 = vmatmul.f32.gmra.mxu1 %v898_v41 }
 0x111   : > { %901 = vtanh.f32 %v305_v44  ;;  %501 = vmatmul.f32.gmra.mxu3 %v900_v43 }
 0x112   : > { %903 = vtanh.f32 %v344_v45 }
 0x117   : > { %v902_v48 = vpop.eup %901 }
 0x118   : > { %v904_v49 = vpop.eup %903  ;;  %v308_v50 = vpop.f32.mrf.mxu0  ;;  %465 = vmatmul.f32.gmra.mxu1 %v902_v48 }
 0x119   : > { %905 = vtanh.f32 %v308_v50  ;;  %504 = vmatmul.f32.gmra.mxu3 %v904_v49 }
 0x11a   : > { %907 = vtanh.f32 %v347_v51 }
 0x11f   : > { %v906_v52 = vpop.eup %905 }
 0x120   : > { %v908_v53 = vpop.eup %907  ;;  %v311_v54 = vpop.f32.mrf.mxu0  ;;  %468 = vmatmul.f32.gmra.mxu1 %v906_v52 }
 0x121   : > { %909 = vtanh.f32 %v311_v54  ;;  %507 = vmatmul.f32.gmra.mxu3 %v908_v53 }
 0x122   : > { %911 = vtanh.f32 %v350_v55 }
 0x127   : > { %v910_v56 = vpop.eup %909 }
 0x128   : > { %v912_v57 = vpop.eup %911  ;;  %v314_v58 = vpop.f32.mrf.mxu0  ;;  %471 = vmatmul.f32.gmra.mxu1 %v910_v56 }
 0x129   : > { %913 = vtanh.f32 %v314_v58  ;;  %510 = vmatmul.f32.gmra.mxu3 %v912_v57 }
 0x12a   : > { %915 = vtanh.f32 %v353_v59 }
 0x12d   : > { %v427_v60 = vpop.f32.mrf.mxu1 }
 0x12e   : > { %917 = vtanh.f32 %v427_v60 }
 0x12f   : > { %v914_v61 = vpop.eup %913 }
 0x130   : > { %v916_v62 = vpop.eup %915  ;;  %v317_v63 = vpop.f32.mrf.mxu0  ;;  %474 = vmatmul.f32.gmra.mxu1 %v914_v61 }
 0x131   : > { %919 = vtanh.f32 %v317_v63  ;;  %513 = vmatmul.f32.gmra.mxu3 %v916_v62 }
 0x132   : > { %921 = vtanh.f32 %v356_v0 }
 0x134   : > { %v918_v1 = vpop.eup %917 }
 0x135   : > { %v430_v2 = vpop.f32.mrf.mxu1  ;;  %587 = vmatmul.f32.vlgmr.msra.gmra.mxu2 %v918_v1 }
 0x136   : > { %923 = vtanh.f32 %v430_v2 }
 0x137   : > { %v920_v3 = vpop.eup %919 }
 0x138   : > { %v922_v4 = vpop.eup %921  ;;  %v320_v5 = vpop.f32.mrf.mxu0  ;;  %477 = vmatmul.f32.gmra.mxu1 %v920_v3 }
 0x139   : > { %925 = vtanh.f32 %v320_v5  ;;  %516 = vmatmul.f32.gmra.mxu3 %v922_v4 }
 0x13a   : > { %927 = vtanh.f32 %v359_v6 }
 0x13c   : > { %v924_v7 = vpop.eup %923 }
 0x13d   : > { %v433_v8 = vpop.f32.mrf.mxu1  ;;  %590 = vmatmul.f32.gmra.mxu2 %v924_v7 }
 0x13e   : > { %929 = vtanh.f32 %v433_v8 }
 0x13f   : > { %v926_v9 = vpop.eup %925 }
 0x140   : > { %v928_v10 = vpop.eup %927  ;;  %v323_v11 = vpop.f32.mrf.mxu0  ;;  %480 = vmatmul.f32.gmra.mxu1 %v926_v9 }
 0x141   : > { %931 = vtanh.f32 %v323_v11  ;;  %519 = vmatmul.f32.gmra.mxu3 %v928_v10 }
 0x144   : > { %v930_v12 = vpop.eup %929 }
 0x145   : > { %v436_v13 = vpop.f32.mrf.mxu1  ;;  %593 = vmatmul.f32.gmra.mxu2 %v930_v12 }
 0x146   : > { %933 = vtanh.f32 %v436_v13 }
 0x147   : > { %v932_v14 = vpop.eup %931 }
 0x148   : > { %v326_v15 = vpop.f32.mrf.mxu0  ;;  %483 = vmatmul.f32.gmra.mxu1 %v932_v14 }
 0x149   : > { %935 = vtanh.f32 %v326_v15 }
 0x14c   : > { %v934_v16 = vpop.eup %933 }
 0x14d   : > { %v439_v17 = vpop.f32.mrf.mxu1  ;;  %596 = vmatmul.f32.gmra.mxu2 %v934_v16 }
 0x14e   : > { %937 = vtanh.f32 %v439_v17 }
 0x14f   : > { %v936_v18 = vpop.eup %935 }
 0x150   : > { %v329_v19 = vpop.f32.mrf.mxu0  ;;  %486 = vmatmul.f32.gmra.mxu1 %v936_v18 }
 0x151   : > { %939 = vtanh.f32 %v329_v19 }
 0x154   : > { %v938_v20 = vpop.eup %937 }
 0x155   : > { %v442_v21 = vpop.f32.mrf.mxu1  ;;  %599 = vmatmul.f32.gmra.mxu2 %v938_v20 }
 0x156   : > { %941 = vtanh.f32 %v442_v21 }
 0x157   : > { %v940_v22 = vpop.eup %939 }
 0x158   : > { %v332_v23 = vpop.f32.mrf.mxu0  ;;  %489 = vmatmul.f32.gmra.mxu1 %v940_v22 }
 0x159   : > { %943 = vtanh.f32 %v332_v23 }
 0x15c   : > { %v942_v24 = vpop.eup %941 }
 0x15d   : > { %v445_v25 = vpop.f32.mrf.mxu1  ;;  %602 = vmatmul.f32.gmra.mxu2 %v942_v24 }
 0x15e   : > { %945 = vtanh.f32 %v445_v25 }
 0x15f   : > { %v944_v26 = vpop.eup %943 }
 0x160   : > { %v335_v27 = vpop.f32.mrf.mxu0  ;;  %492 = vmatmul.f32.gmra.mxu1 %v944_v26 }
 0x161   : > { %947 = vtanh.f32 %v335_v27 }
 0x164   : > { %v946_v28 = vpop.eup %945 }
 0x165   : > { %v448_v29 = vpop.f32.mrf.mxu1  ;;  %605 = vmatmul.f32.gmra.mxu2 %v946_v28 }
 0x166   : > { %949 = vtanh.f32 %v448_v29 }
 0x167   : > { %v948_v30 = vpop.eup %947 }
 0x168   : > { %495 = vmatmul.f32.gmra.mxu1 %v948_v30 }
 0x16c   : > { %v950_v31 = vpop.eup %949 }
 0x16d   : > { %v451_v32 = vpop.f32.mrf.mxu1  ;;  %608 = vmatmul.f32.gmra.mxu2 %v950_v31 }
 0x16e   : > { %951 = vtanh.f32 %v451_v32 }
 0x174   : > { %v952_v33 = vpop.eup %951 }
 0x175   : > { %v454_v34 = vpop.f32.mrf.mxu1  ;;  %611 = vmatmul.f32.gmra.mxu2 %v952_v33 }
 0x176   : > { %953 = vtanh.f32 %v454_v34 }
 0x17c   : > { %v954_v35 = vpop.eup %953 }
 0x17d   : > { %v457_v36 = vpop.f32.mrf.mxu1  ;;  %614 = vmatmul.f32.gmra.mxu2 %v954_v35 }
 0x17e   : > { %955 = vtanh.f32 %v457_v36 }
 0x184   : > { %v956_v37 = vpop.eup %955 }
 0x185   : > { %v460_v38 = vpop.f32.mrf.mxu1  ;;  %617 = vmatmul.f32.gmra.mxu2 %v956_v37 }
 0x186   : > { %957 = vtanh.f32 %v460_v38 }
 0x18c   : > { %v958_v39 = vpop.eup %957  ;;  %v499_v41 = vpop.f32.mrf.mxu3 }
 0x18d   : > { %v463_v40 = vpop.f32.mrf.mxu1  ;;  %620 = vmatmul.f32.gmra.mxu2 %v958_v39 }
 0x18e   : > { %959 = vtanh.f32 %v463_v40 }
 0x18f   : > { %961 = vtanh.f32 %v499_v41 }
 0x194   : > { %v960_v42 = vpop.eup %959  ;;  %v502_v45 = vpop.f32.mrf.mxu3 }
 0x195   : > { %v962_v43 = vpop.eup %961  ;;  %v466_v44 = vpop.f32.mrf.mxu1  ;;  %623 = vmatmul.f32.gmra.mxu2 %v960_v42 }
 0x196   : > { %963 = vtanh.f32 %v466_v44  ;;  %659 = vmatmul.f32.vlgmr.msra.gmra.mxu3 %v962_v43 }
 0x197   : > { %965 = vtanh.f32 %v502_v45 }
 0x19c   : > { %v964_v46 = vpop.eup %963  ;;  %v505_v49 = vpop.f32.mrf.mxu3 }
 0x19d   : > { %v966_v47 = vpop.eup %965  ;;  %v469_v48 = vpop.f32.mrf.mxu1  ;;  %626 = vmatmul.f32.gmra.mxu2 %v964_v46 }
 0x19e   : > { %967 = vtanh.f32 %v469_v48  ;;  %662 = vmatmul.f32.gmra.mxu3 %v966_v47 }
 0x19f   : > { %969 = vtanh.f32 %v505_v49 }
 0x1a4   : > { %v968_v50 = vpop.eup %967  ;;  %v508_v53 = vpop.f32.mrf.mxu3 }
 0x1a5   : > { %v970_v51 = vpop.eup %969  ;;  %v472_v52 = vpop.f32.mrf.mxu1  ;;  %629 = vmatmul.f32.gmra.mxu2 %v968_v50 }
 0x1a6   : > { %971 = vtanh.f32 %v472_v52  ;;  %665 = vmatmul.f32.gmra.mxu3 %v970_v51 }
 0x1a7   : > { %973 = vtanh.f32 %v508_v53 }
 0x1ac   : > { %v972_v54 = vpop.eup %971  ;;  %v511_v57 = vpop.f32.mrf.mxu3 }
 0x1ad   : > { %v974_v55 = vpop.eup %973  ;;  %v475_v56 = vpop.f32.mrf.mxu1  ;;  %632 = vmatmul.f32.gmra.mxu2 %v972_v54 }
 0x1ae   : > { %975 = vtanh.f32 %v475_v56  ;;  %668 = vmatmul.f32.gmra.mxu3 %v974_v55 }
 0x1af   : > { %977 = vtanh.f32 %v511_v57 }
 0x1b4   : > { %v976_v58 = vpop.eup %975  ;;  %v514_v61 = vpop.f32.mrf.mxu3 }
 0x1b5   : > { %v978_v59 = vpop.eup %977  ;;  %v478_v60 = vpop.f32.mrf.mxu1  ;;  %635 = vmatmul.f32.gmra.mxu2 %v976_v58 }
 0x1b6   : > { %979 = vtanh.f32 %v478_v60  ;;  %671 = vmatmul.f32.gmra.mxu3 %v978_v59 }
 0x1b7   : > { %981 = vtanh.f32 %v514_v61 }
 0x1b8   : > { %v588_v62 = vpop.f32.mrf.mxu2 }
 0x1b9   : > { %983 = vtanh.f32 %v588_v62 }
 0x1bc   : > { %v980_v63 = vpop.eup %979  ;;  %v517_v2 = vpop.f32.mrf.mxu3 }
 0x1bd   : > { %v982_v0 = vpop.eup %981  ;;  %v481_v1 = vpop.f32.mrf.mxu1  ;;  %638 = vmatmul.f32.gmra.mxu2 %v980_v63 }
 0x1be   : > { %985 = vtanh.f32 %v481_v1  ;;  %674 = vmatmul.f32.gmra.mxu3 %v982_v0 }
 0x1bf   : > { %v984_v3 = vpop.eup %983  ;;  %987 = vtanh.f32 %v517_v2 }
 0x1c0   : > { %716 = vst [vmem:[%s1295_s27] sm:$0xff] %v984_v3  ;;  %v591_v4 = vpop.f32.mrf.mxu2 }
 0x1c1   : > { %989 = vtanh.f32 %v591_v4 }
 0x1c4   : > { %v986_v5 = vpop.eup %985  ;;  %v520_v8 = vpop.f32.mrf.mxu3 }
 0x1c5   : > { %v988_v6 = vpop.eup %987  ;;  %v484_v7 = vpop.f32.mrf.mxu1  ;;  %641 = vmatmul.f32.gmra.mxu2 %v986_v5 }
 0x1c6   : > { %991 = vtanh.f32 %v484_v7  ;;  %677 = vmatmul.f32.gmra.mxu3 %v988_v6 }
 0x1c7   : > { %v990_v9 = vpop.eup %989  ;;  %993 = vtanh.f32 %v520_v8 }
 0x1c8   : > { %717 = vst [vmem:[%s1295_s27 + $0x8] sm:$0xff] %v990_v9  ;;  %v594_v10 = vpop.f32.mrf.mxu2 }
 0x1c9   : > { %995 = vtanh.f32 %v594_v10 }
 0x1cc   : > { %v992_v11 = vpop.eup %991 }
 0x1cd   : > { %v994_v12 = vpop.eup %993  ;;  %v487_v13 = vpop.f32.mrf.mxu1  ;;  %644 = vmatmul.f32.gmra.mxu2 %v992_v11 }
 0x1ce   : > { %997 = vtanh.f32 %v487_v13  ;;  %680 = vmatmul.f32.gmra.mxu3 %v994_v12 }
 0x1cf   : > { %v996_v14 = vpop.eup %995 }
 0x1d0   : > { %718 = vst [vmem:[%s1295_s27 + $0x10] sm:$0xff] %v996_v14  ;;  %v597_v15 = vpop.f32.mrf.mxu2 }
 0x1d1   : > { %999 = vtanh.f32 %v597_v15 }
 0x1d4   : > { %v998_v16 = vpop.eup %997 }
 0x1d5   : > { %v490_v17 = vpop.f32.mrf.mxu1  ;;  %647 = vmatmul.f32.gmra.mxu2 %v998_v16 }
 0x1d6   : > { %1001 = vtanh.f32 %v490_v17 }
 0x1d7   : > { %v1000_v18 = vpop.eup %999 }
 0x1d8   : > { %719 = vst [vmem:[%s1295_s27 + $0x18] sm:$0xff] %v1000_v18  ;;  %v600_v19 = vpop.f32.mrf.mxu2 }
 0x1d9   : > { %1003 = vtanh.f32 %v600_v19 }
 0x1dc   : > { %v1002_v20 = vpop.eup %1001 }
 0x1dd   : > { %v493_v21 = vpop.f32.mrf.mxu1  ;;  %650 = vmatmul.f32.gmra.mxu2 %v1002_v20 }
 0x1de   : > { %1005 = vtanh.f32 %v493_v21 }
 0x1df   : > { %v1004_v22 = vpop.eup %1003 }
 0x1e0   : > { %720 = vst [vmem:[%s1295_s27 + $0x20] sm:$0xff] %v1004_v22  ;;  %v603_v23 = vpop.f32.mrf.mxu2 }
 0x1e1   : > { %1007 = vtanh.f32 %v603_v23 }
 0x1e4   : > { %v1006_v24 = vpop.eup %1005 }
 0x1e5   : > { %v496_v25 = vpop.f32.mrf.mxu1  ;;  %653 = vmatmul.f32.gmra.mxu2 %v1006_v24 }
 0x1e6   : > { %1009 = vtanh.f32 %v496_v25 }
 0x1e7   : > { %v1008_v26 = vpop.eup %1007 }
 0x1e8   : > { %721 = vst [vmem:[%s1295_s27 + $0x28] sm:$0xff] %v1008_v26  ;;  %v606_v27 = vpop.f32.mrf.mxu2 }
 0x1e9   : > { %1011 = vtanh.f32 %v606_v27 }
 0x1ec   : > { %v1010_v28 = vpop.eup %1009 }
 0x1ed   : > { %656 = vmatmul.f32.gmra.mxu2 %v1010_v28 }
 0x1ef   : > { %v1012_v29 = vpop.eup %1011 }
 0x1f0   : > { %722 = vst [vmem:[%s1295_s27 + $0x30] sm:$0xff] %v1012_v29  ;;  %v609_v30 = vpop.f32.mrf.mxu2 }
 0x1f1   : > { %1013 = vtanh.f32 %v609_v30 }
 0x1f7   : > { %v1014_v31 = vpop.eup %1013 }
 0x1f8   : > { %723 = vst [vmem:[%s1295_s27 + $0x38] sm:$0xff] %v1014_v31  ;;  %v612_v32 = vpop.f32.mrf.mxu2 }
 0x1f9   : > { %1015 = vtanh.f32 %v612_v32 }
 0x1ff   : > { %v1016_v33 = vpop.eup %1015 }
 0x200   : > { %724 = vst [vmem:[%s1295_s27 + $0x40] sm:$0xff] %v1016_v33  ;;  %v615_v34 = vpop.f32.mrf.mxu2 }
 0x201   : > { %1017 = vtanh.f32 %v615_v34 }
 0x207   : > { %v1018_v35 = vpop.eup %1017 }
 0x208   : > { %725 = vst [vmem:[%s1295_s27 + $0x48] sm:$0xff] %v1018_v35  ;;  %v618_v36 = vpop.f32.mrf.mxu2 }
 0x209   : > { %1019 = vtanh.f32 %v618_v36 }
 0x20f   : > { %v1020_v37 = vpop.eup %1019 }
 0x210   : > { %726 = vst [vmem:[%s1295_s27 + $0x50] sm:$0xff] %v1020_v37  ;;  %v621_v38 = vpop.f32.mrf.mxu2 }
 0x211   : > { %1021 = vtanh.f32 %v621_v38 }
 0x217   : > { %v1022_v39 = vpop.eup %1021 }
 0x218   : > { %727 = vst [vmem:[%s1295_s27 + $0x58] sm:$0xff] %v1022_v39  ;;  %v624_v40 = vpop.f32.mrf.mxu2 }
 0x219   : > { %1023 = vtanh.f32 %v624_v40  ;;  %v660_v41 = vpop.f32.mrf.mxu3 }
 0x21a   : > { %1025 = vtanh.f32 %v660_v41 }
 0x21f   : > { %v1024_v42 = vpop.eup %1023 }
 0x220   : > { %v1026_v43 = vpop.eup %1025  ;;  %728 = vst [vmem:[%s1295_s27 + $0x60] sm:$0xff] %v1024_v42  ;;  %v627_v44 = vpop.f32.mrf.mxu2 }
 0x221   : > { %1027 = vtanh.f32 %v627_v44  ;;  %740 = vst [vmem:[%s1295_s27 + $0xc0] sm:$0xff] %v1026_v43  ;;  %v663_v45 = vpop.f32.mrf.mxu3 }
 0x222   : > { %1029 = vtanh.f32 %v663_v45 }
 0x227   : > { %v1028_v46 = vpop.eup %1027 }
 0x228   : > { %v1030_v47 = vpop.eup %1029  ;;  %729 = vst [vmem:[%s1295_s27 + $0x68] sm:$0xff] %v1028_v46  ;;  %v630_v48 = vpop.f32.mrf.mxu2 }
 0x229   : > { %1031 = vtanh.f32 %v630_v48  ;;  %741 = vst [vmem:[%s1295_s27 + $0xc8] sm:$0xff] %v1030_v47  ;;  %v666_v49 = vpop.f32.mrf.mxu3 }
 0x22a   : > { %1033 = vtanh.f32 %v666_v49 }
 0x22f   : > { %v1032_v50 = vpop.eup %1031 }
 0x230   : > { %v1034_v51 = vpop.eup %1033  ;;  %730 = vst [vmem:[%s1295_s27 + $0x70] sm:$0xff] %v1032_v50  ;;  %v633_v52 = vpop.f32.mrf.mxu2 }
 0x231   : > { %1035 = vtanh.f32 %v633_v52  ;;  %742 = vst [vmem:[%s1295_s27 + $0xd0] sm:$0xff] %v1034_v51  ;;  %v669_v53 = vpop.f32.mrf.mxu3 }
 0x232   : > { %1037 = vtanh.f32 %v669_v53 }
 0x237   : > { %v1036_v54 = vpop.eup %1035 }
 0x238   : > { %v1038_v55 = vpop.eup %1037  ;;  %731 = vst [vmem:[%s1295_s27 + $0x78] sm:$0xff] %v1036_v54  ;;  %v636_v56 = vpop.f32.mrf.mxu2 }
 0x239   : > { %1039 = vtanh.f32 %v636_v56  ;;  %743 = vst [vmem:[%s1295_s27 + $0xd8] sm:$0xff] %v1038_v55  ;;  %v672_v57 = vpop.f32.mrf.mxu3 }
 0x23a   : > { %1041 = vtanh.f32 %v672_v57 }
 0x23f   : > { %v1040_v58 = vpop.eup %1039 }
 0x240   : > { %v1042_v59 = vpop.eup %1041  ;;  %732 = vst [vmem:[%s1295_s27 + $0x80] sm:$0xff] %v1040_v58  ;;  %v639_v60 = vpop.f32.mrf.mxu2 }
 0x241   : > { %1043 = vtanh.f32 %v639_v60  ;;  %744 = vst [vmem:[%s1295_s27 + $0xe0] sm:$0xff] %v1042_v59  ;;  %v675_v61 = vpop.f32.mrf.mxu3 }
 0x242   : > { %1045 = vtanh.f32 %v675_v61 }
 0x247   : > { %v1044_v62 = vpop.eup %1043 }
 0x248   : > { %v1046_v63 = vpop.eup %1045  ;;  %733 = vst [vmem:[%s1295_s27 + $0x88] sm:$0xff] %v1044_v62  ;;  %v642_v0 = vpop.f32.mrf.mxu2 }
 0x249   : > { %1047 = vtanh.f32 %v642_v0  ;;  %745 = vst [vmem:[%s1295_s27 + $0xe8] sm:$0xff] %v1046_v63  ;;  %v678_v1 = vpop.f32.mrf.mxu3 }
 0x24a   : > { %1049 = vtanh.f32 %v678_v1 }
 0x24f   : > { %v1048_v2 = vpop.eup %1047 }
 0x250   : > { %v1050_v3 = vpop.eup %1049  ;;  %734 = vst [vmem:[%s1295_s27 + $0x90] sm:$0xff] %v1048_v2  ;;  %v645_v4 = vpop.f32.mrf.mxu2 }
 0x251   : > { %1051 = vtanh.f32 %v645_v4  ;;  %746 = vst [vmem:[%s1295_s27 + $0xf0] sm:$0xff] %v1050_v3  ;;  %v681_v5 = vpop.f32.mrf.mxu3 }
 0x252   : > { %1053 = vtanh.f32 %v681_v5 }
 0x257   : > { %v1052_v6 = vpop.eup %1051 }
 0x258   : > { %v1054_v7 = vpop.eup %1053  ;;  %735 = vst [vmem:[%s1295_s27 + $0x98] sm:$0xff] %v1052_v6  ;;  %v648_v8 = vpop.f32.mrf.mxu2 }
 0x259   : > { %1055 = vtanh.f32 %v648_v8  ;;  %747 = vst [vmem:[%s1295_s27 + $0xf8] sm:$0xff] %v1054_v7 }
 0x25f   : > { %v1056_v9 = vpop.eup %1055 }
 0x260   : > { %736 = vst [vmem:[%s1295_s27 + $0xa0] sm:$0xff] %v1056_v9  ;;  %v651_v10 = vpop.f32.mrf.mxu2 }
 0x261   : > { %1057 = vtanh.f32 %v651_v10 }
 0x267   : > { %v1058_v11 = vpop.eup %1057 }
 0x268   : > { %737 = vst [vmem:[%s1295_s27 + $0xa8] sm:$0xff] %v1058_v11  ;;  %v654_v12 = vpop.f32.mrf.mxu2 }
 0x269   : > { %1059 = vtanh.f32 %v654_v12 }
 0x26f   : > { %v1060_v13 = vpop.eup %1059 }
 0x270   : > { %738 = vst [vmem:[%s1295_s27 + $0xb0] sm:$0xff] %v1060_v13  ;;  %v657_v14 = vpop.f32.mrf.mxu2 }
 0x271   : > { %1061 = vtanh.f32 %v657_v14 }
 0x277   : > { %v1062_v15 = vpop.eup %1061 }
 0x278   : > { %739 = vst [vmem:[%s1295_s27 + $0xb8] sm:$0xff] %v1062_v15 }
 0x279 PF: > { %s14_s15 = sadd.s32 1, %s1069_s15  }
 0x27a   : > { %p11_p4 = scmp.ge.s32.totalorder %s14_s15, 4  }
 0x27c   :  { %13 = sbr.rel (!%p11_p4) target bundleno = 1 (0x1), region = 66 }

</bundles_post_ra>
